<compile_context>
chip_gen: v5e
topology: v5e:2x2
jax: 0.10.0
libtpu: 0.0.40
codegen_flags: <defaults>
</compile_context>

<pallas_src>
import jax
import jax.numpy as jnp
from jax.experimental import pallas as pl
from jax.experimental.pallas import tpu as pltpu

EPS = 1e-5


def _adaptive_norm_kernel(w_ref, x_ref, ab_ref, o_ref):
    # w_ref:  SMEM (1,)     -> [w_0]
    # x_ref:  VMEM (bm, HW) -> rows = (n, c) instances
    # ab_ref: VMEM (bm, 2)  -> col 0 = w_1*gamma per row, col 1 = w_1*beta per row
    x32 = x_ref[...].astype(jnp.float32)
    hw = x32.shape[-1]
    inv_hw = jnp.float32(1.0 / hw)

    # Single-pass instance-norm statistics (biased variance, as PyTorch IN).
    s1 = jnp.sum(x32, axis=-1, keepdims=True)
    s2 = jnp.sum(x32 * x32, axis=-1, keepdims=True)
    mean = s1 * inv_hw
    var = jnp.maximum(s2 * inv_hw - mean * mean, 0.0)
    rstd = jax.lax.rsqrt(var + EPS)

    w0 = w_ref[0]
    a = ab_ref[:, 0:1]  # w1 * gamma   (bm, 1)
    b = ab_ref[:, 1:2]  # w1 * beta    (bm, 1)

    # Fold everything into one per-element FMA:
    #   out = w0*x + w1*(gamma*(x-mean)*rstd + beta)
    #       = (w0 + w1*gamma*rstd)*x + (w1*beta - w1*gamma*mean*rstd)
    scale = w0 + a * rstd            # (bm, 1) f32
    shift = b - a * (mean * rstd)    # (bm, 1) f32

    if o_ref.dtype == jnp.float32:
        o_ref[...] = scale * x32 + shift
    else:
        # Apply in the native (e.g. bf16) dtype: per-row scale/shift are cast once,
        # the (bm, HW) tile is never materialized in f32.
        o_ref[...] = (scale.astype(o_ref.dtype) * x_ref[...]
                      + shift.astype(o_ref.dtype))


def _plan_tiles(R, HW, x_dtype):
    """Pick the row-block size bm, grid length, and an explicit VMEM limit."""
    ebytes = jnp.dtype(x_dtype).itemsize
    # Rows per packed sublane tile: 8 for 32-bit, 16 for 16-bit, 32 for 8-bit.
    unit = 8 * max(1, 4 // ebytes)

    # Chip-aware VMEM budget; conservative 64 MiB (v7x per-TC) fallback.
    try:
        info = pltpu.get_tpu_info()
        vmem_cap = int(getattr(info, "vmem_capacity_bytes", 64 * 1024 * 1024))
    except Exception:
        vmem_cap = 64 * 1024 * 1024
    budget = min(vmem_cap // 2, 40 * 1024 * 1024)

    # Per-row VMEM footprint of one grid step:
    #   2x input + 2x output double-buffers (native dtype)
    #   ~2 f32 working tiles inside the kernel (stats / apply temporaries)
    #   (bm, 2) affine block, lane-padded to 128 lanes, double-buffered (2*512 B/row)
    per_row = 4 * HW * ebytes + 2 * HW * 4 + 2 * 512

    bm = max(unit, (budget // per_row) // unit * unit)
    # No bigger than needed to cover all rows.
    bm = min(bm, pl.cdiv(R, unit) * unit)
    # Guarantee >= 2 grid steps when possible so v7x's 2 TensorCores both work.
    if R > unit:
        bm = min(bm, pl.cdiv(pl.cdiv(R, 2), unit) * unit)
    bm = max(bm, unit)

    grid_m = pl.cdiv(R, bm)

    footprint = bm * per_row
    vmem_limit = int(footprint * 2 + (4 << 20))           # 2x headroom + slack
    vmem_limit = max(vmem_limit, 16 * 1024 * 1024)        # never below v5e default
    vmem_limit = min(vmem_limit, 48 * 1024 * 1024, vmem_cap * 3 // 4)
    return bm, grid_m, int(vmem_limit)


def adaptive_norm(x_nchw, w0, w1, gamma, beta):
    """x_nchw: (N, C, H, W). gamma/beta: (C,). w0/w1: scalars."""
    N, C, H, W = x_nchw.shape
    R = N * C
    HW = H * W

    # Flatten NCHW -> (N*C, H*W); rows are (n, c) instances, channel = row % C.
    x2d = x_nchw.reshape(R, HW)

    bm, grid_m, vmem_limit = _plan_tiles(R, HW, x_nchw.dtype)

    # Per-row affine params with w1 pre-folded: a = w1*gamma, b = w1*beta.
    w1_f = jnp.asarray(w1, jnp.float32)
    a = w1_f * gamma.astype(jnp.float32)
    b = w1_f * beta.astype(jnp.float32)
    ab = jnp.stack([jnp.tile(a, N), jnp.tile(b, N)], axis=-1)   # (R, 2) f32

    w0_arr = jnp.asarray(w0, jnp.float32).reshape(1)

    ebytes = jnp.dtype(x_nchw.dtype).itemsize
    cost = pl.CostEstimate(
        flops=6 * R * HW,               # stats + fused apply, ~6 ops/element
        transcendentals=R,              # one rsqrt per (n, c) instance
        bytes_accessed=2 * R * HW * ebytes + ab.size * 4 + 4,
    )

    out2d = pl.pallas_call(
        _adaptive_norm_kernel,
        out_shape=jax.ShapeDtypeStruct((R, HW), x_nchw.dtype),
        grid_spec=pltpu.PrefetchScalarGridSpec(
            num_scalar_prefetch=0,
            grid=(grid_m,),
            in_specs=[
                pl.BlockSpec(memory_space=pltpu.MemorySpace.SMEM),   # [w0]
                pl.BlockSpec((bm, HW), lambda i: (i, 0)),            # x row tile
                pl.BlockSpec((bm, 2), lambda i: (i, 0)),             # per-row affine
            ],
            out_specs=pl.BlockSpec((bm, HW), lambda i: (i, 0)),
        ),
        compiler_params=pltpu.CompilerParams(
            # Rows are fully independent -> shard the row grid across TensorCores.
            dimension_semantics=("parallel",),
            vmem_limit_bytes=vmem_limit,
        ),
        cost_estimate=cost,
    )(w0_arr, x2d, ab)

    return out2d.reshape(N, C, H, W)


def adaptive_norm_ref(x, w0, w1, gamma, beta):
    """Pure-JAX reference matching PyTorch AdaptiveNorm semantics (NCHW)."""
    mean = jnp.mean(x, axis=(2, 3), keepdims=True)
    var = jnp.mean((x - mean) ** 2, axis=(2, 3), keepdims=True)
    x_hat = (x - mean) / jnp.sqrt(var + EPS)
    inorm = x_hat * gamma.reshape(1, -1, 1, 1) + beta.reshape(1, -1, 1, 1)
    return w0 * x + w1 * inorm


if __name__ == "__main__":
    key = jax.random.PRNGKey(0)
    N, C, H, W = 2, 4, 16, 16

    x = jax.random.normal(key, (N, C, H, W), dtype=jnp.float32)

    # PyTorch module init: w_0 = 1.0, w_1 = 0.0, gamma = ones(C), beta = zeros(C).
    # Perturb w_1 / gamma / beta so the instance-norm path is exercised numerically.
    w0 = jnp.float32(1.0)
    w1 = jnp.float32(0.5)
    gamma = jnp.ones((C,), jnp.float32) * 1.25
    beta = jnp.ones((C,), jnp.float32) * 0.1

    out = adaptive_norm(x, w0, w1, gamma, beta)
    out = jax.block_until_ready(out)

    ref = adaptive_norm_ref(x, w0, w1, gamma, beta)
    assert out.shape == (N, C, H, W)
    err = float(jnp.max(jnp.abs(out - ref)))
    assert jnp.allclose(out, ref, atol=1e-5, rtol=1e-5), err

    print("KERNEL_OK")
</pallas_src>

<mosaic_0001>
module attributes {stable_mosaic.version = 11 : i64} {
  func.func @_adaptive_norm_kernel(%arg0: i32, %arg1: memref<1xf32, #tpu.memory_space<smem>>, %arg2: memref<8x256xf32, #tpu.memory_space<vmem>>, %arg3: memref<8x2xf32, #tpu.memory_space<vmem>>, %arg4: memref<8x256xf32, #tpu.memory_space<vmem>>) attributes {dimension_semantics = [#tpu.dimension_semantics<parallel>], iteration_bounds = array<i64: 1>, scalar_prefetch = 0 : i64, scratch_operands = 0 : i64, tpu.core_type = #tpu.core_type<tc>, window_params = [{transform_indices = @transform_0, window_bounds = array<i64: 1>}, {transform_indices = @transform_1, window_bounds = array<i64: 8, 256>}, {transform_indices = @transform_2, window_bounds = array<i64: 8, 2>}, {transform_indices = @transform_3, window_bounds = array<i64: 8, 256>}]} {
    %c0 = arith.constant 0 : index
    %c0_0 = arith.constant 0 : index
    %0 = vector.load %arg2[%c0, %c0_0] : memref<8x256xf32, #tpu.memory_space<vmem>>, vector<8x256xf32>
    %cst = arith.constant dense<0.000000e+00> : vector<8xf32>
    %1 = vector.multi_reduction <add>, %0, %cst [1] : vector<8x256xf32> to vector<8xf32>
    %2 = vector.shape_cast %1 : vector<8xf32> to vector<8x1xf32>
    %3 = arith.mulf %0, %0 : vector<8x256xf32>
    %cst_1 = arith.constant dense<0.000000e+00> : vector<8xf32>
    %4 = vector.multi_reduction <add>, %3, %cst_1 [1] : vector<8x256xf32> to vector<8xf32>
    %5 = vector.shape_cast %4 : vector<8xf32> to vector<8x1xf32>
    %cst_2 = arith.constant 3.906250e-03 : f32
    %6 = vector.broadcast %cst_2 : f32 to vector<8x1xf32>
    %7 = arith.mulf %2, %6 : vector<8x1xf32>
    %cst_3 = arith.constant 3.906250e-03 : f32
    %8 = vector.broadcast %cst_3 : f32 to vector<8x1xf32>
    %9 = arith.mulf %5, %8 : vector<8x1xf32>
    %10 = arith.mulf %7, %7 : vector<8x1xf32>
    %11 = arith.subf %9, %10 : vector<8x1xf32>
    %cst_4 = arith.constant 0.000000e+00 : f32
    %12 = vector.broadcast %cst_4 : f32 to vector<8x1xf32>
    %13 = arith.maximumf %11, %12 : vector<8x1xf32>
    %cst_5 = arith.constant 9.99999974E-6 : f32
    %14 = vector.broadcast %cst_5 : f32 to vector<8x1xf32>
    %15 = arith.addf %13, %14 : vector<8x1xf32>
    %16 = math.rsqrt %15 : vector<8x1xf32>
    %c0_6 = arith.constant 0 : index
    %17 = memref.load %arg1[%c0_6] : memref<1xf32, #tpu.memory_space<smem>>
    %c0_7 = arith.constant 0 : index
    %c0_8 = arith.constant 0 : index
    %18 = vector.load %arg3[%c0_7, %c0_8] : memref<8x2xf32, #tpu.memory_space<vmem>>, vector<8x1xf32>
    %c0_9 = arith.constant 0 : index
    %c1 = arith.constant 1 : index
    %19 = vector.load %arg3[%c0_9, %c1] : memref<8x2xf32, #tpu.memory_space<vmem>>, vector<8x1xf32>
    %20 = arith.mulf %18, %16 : vector<8x1xf32>
    %21 = vector.broadcast %17 : f32 to vector<8x1xf32>
    %22 = arith.addf %21, %20 : vector<8x1xf32>
    %23 = arith.mulf %7, %16 : vector<8x1xf32>
    %24 = arith.mulf %18, %23 : vector<8x1xf32>
    %25 = arith.subf %19, %24 : vector<8x1xf32>
    %26 = vector.broadcast %22 : vector<8x1xf32> to vector<8x256xf32>
    %27 = arith.mulf %26, %0 : vector<8x256xf32>
    %28 = vector.broadcast %25 : vector<8x1xf32> to vector<8x256xf32>
    %29 = arith.addf %27, %28 : vector<8x256xf32>
    %c0_10 = arith.constant 0 : index
    %c0_11 = arith.constant 0 : index
    %30 = vector.load %arg4[%c0_10, %c0_11] : memref<8x256xf32, #tpu.memory_space<vmem>>, vector<8x256xf32>
    tpu.vector_store %arg4[%c0_10, %c0_11], %29 {strides = array<i32>} : memref<8x256xf32, #tpu.memory_space<vmem>>, vector<8x256xf32>,
    return
  }
  func.func @transform_0(%arg0: i32) -> i32 {
    %c0_i32 = arith.constant 0 : i32
    %c0_i32_0 = arith.constant 0 : i32
    return %c0_i32 : i32
  }
  func.func @transform_1(%arg0: i32) -> (i32, i32) {
    %c0_i32 = arith.constant 0 : i32
    %c0_i32_0 = arith.constant 0 : i32
    return %arg0, %c0_i32 : i32, i32
  }
  func.func @transform_2(%arg0: i32) -> (i32, i32) {
    %c0_i32 = arith.constant 0 : i32
    %c0_i32_0 = arith.constant 0 : i32
    return %arg0, %c0_i32 : i32, i32
  }
  func.func @transform_3(%arg0: i32) -> (i32, i32) {
    %c0_i32 = arith.constant 0 : i32
    %c0_i32_0 = arith.constant 0 : i32
    return %arg0, %c0_i32 : i32, i32
  }
}

</mosaic_0001>

<bundles_post_ra>
// kernel: tpu_custom_call.1
= control target key start
LH: loop header
LB: loop body
LE: loop exit
PB: predicated region body
PF: predicated region fallthrough
CT: control target
= control target key end

     0   :  { %9 = vsyncpa [#allocation4], 0  ;;  %s200_s0 = inlined_call_operand.<no memory space> [shape: f32[1], index: 0, kind: input, shape index: {}]   ;;  %s201_s1 = inlined_call_operand.hbm [shape: f32[8,256], index: 1, kind: input, shape index: {}]   ;;  %s202_s2 = inlined_call_operand.vmem [shape: f32[8,2], index: 2, kind: input, shape index: {}]   ;;  %s203_s3 = inlined_call_operand.hbm [shape: f32[8,256], index: 3, kind: output, shape index: {}]  }
   0x1   :  { %10 = vsyncpa [#allocation5], 0  ;;  %s18_s14 = sshll.u32 %s201_s1, 4  ;;  %s163_s15 = smov [#allocation3]   ;;  %s19_s14 = int_to_ptr.hbm [resolvable:$true] %s18_s14 }
   0x2   :  { %s20_s16 = sshll.u32 %s163_s15, 4  ;;  %s21_s16 = int_to_ptr.vmem [resolvable:$true] %s20_s16 }
   0x3   :  { %23 = dma.hbm_to_vmem [thread:$0]  %s19_s14, 256, %s21_s16, [#allocation4]  }
   0x4   :  { %159 = dma.done.wait [#allocation4], 256  }
   0x5   :  { %160 = vsyncadd [#allocation4], 4294967040  ;;  %v30_v0 = vld [vmem:[#allocation3] sm:$0xff]  ;;  %v31_v1 = vld [vmem:[#allocation3 + $0x8] sm:$0xff]  ;;  %v164_v9 = vmov 0   ;;  %s165_s18 = smov 1   ;;  %v59_v26 = vstv %s200_s0 }
   0x6   :  { %v32_v2 = vadd.f32 %v31_v1, %v30_v0  ;;  %v35_v3 = vmul.f32 %v30_v0, %v30_v0  ;;  %v36_v4 = vmul.f32 %v31_v1, %v31_v1  ;;  %106 = vset.pattern.permute.xlu1 %v164_v9  ;;  %v57_v23 = vld [vmem:[%s202_s2] sm:$0xff]  ;;  %v166_v28 = vmov 1   ;;  %s167_s2 = smov [#allocation6]   ;;  %s91_s24 = sshll.u32 %s203_s3, 4  ;;  %s92_s24 = int_to_ptr.hbm [resolvable:$true] %s91_s24 }
   0x7   :  { %107 = vset.pattern.permute.xlu2 %v166_v28  ;;  %108 = vset.pattern.permute.xlu0 %v166_v28  ;;  %s89_s21 = sshll.u32 %s167_s2, 4  ;;  %s90_s21 = int_to_ptr.vmem [resolvable:$true] %s89_s21 }
   0x8   :  { %33 = vadd.xlane.f32.xlu0 %v32_v2  ;;  %v37_v5 = vadd.f32 %v36_v4, %v35_v3 }
  0x10   :  { %38 = vadd.xlane.f32.xlu0 %v37_v5 }
  0x7b   :  { %v34_v6 = vpop.xlane.xlu0 %33 }
  0x7c   :  { %v40_v7 = vmul.f32 0.00390625, %v34_v6 }
  0x7e   :  { %v42_v10 = vmul.f32 %v40_v7, %v40_v7 }
  0x83   :  { %v39_v8 = vpop.xlane.xlu0 %38 }
  0x84   :  { %v41_v11 = vmul.f32 0.00390625, %v39_v8 }
  0x86   :  { %v43_v12 = vsub.f32 %v41_v11, %v42_v10 }
  0x88   :  { %v44_v13 = vmax.f32 %v43_v12, 0.0 }
  0x8a   :  { %v45_v14 = vadd.f32 1e-05, %v44_v13 }
  0x8c   :  { %109 = vrsqrt.f32 %v45_v14  ;;  %vm52_vm1 = vweird.f32 %v45_v14 }
  0x92   :  { %v110_v15 = vpop.eup %109 }
  0x93   :  { %v47_v16 = vmul.f32 %v110_v15, %v45_v14  ;;  %vm53_vm0 = vweird.f32 %v110_v15 }
  0x94   :  { %vm54_vm2 = vmor %vm52_vm1, %vm53_vm0 }
  0x95   :  { %v48_v17 = vmul.f32 %v110_v15, %v47_v16 }
  0x97   :  { %v49_v18 = vmul.f32 0.5, %v48_v17 }
  0x99   :  { %v50_v19 = vsub.f32 1.5, %v49_v18 }
  0x9b   :  { %v51_v20 = vmul.f32 %v110_v15, %v50_v19 }
  0x9d   :  { %v55_v21 = vsel %vm54_vm2, %v110_v15, %v51_v20 }
  0x9e   :  { %v61_v22 = vmul.f32 %v55_v21, %v40_v7  ;;  %v58_v25 = vmul.f32 %v57_v23, %v55_v21 }
  0xa0   :  { %v62_v24 = vmul.f32 %v61_v22, %v57_v23  ;;  %v60_v27 = vadd.f32 %v59_v26, %v58_v25 }
  0xa2   :  { %64 = vrot.lane.b32.xlu1 %v62_v24, %s165_s18 }
  0xaa   :  { %70 = vperm.xlu1 %106, %v60_v27  }
 0x114   :  { %v65_v29 = vpop.permute.xlu1 %64 }
 0x115   :  { %v67_v30 = vsub.f32 %v57_v23, %v65_v29 }
 0x117   :  { %77 = vperm.xlu2 %107, %v67_v30  }
 0x11c   :  { %v71_v31 = vpop.permute.xlu1 %70 }
 0x11d   :  { %v73_v32 = vmul.f32 %v71_v31, %v30_v0  ;;  %v74_v33 = vmul.f32 %v71_v31, %v31_v1 }
 0x171   :  { %v78_v34 = vpop.permute.xlu2 %77 }
 0x172   :  { %v80_v35 = vadd.f32 %v78_v34, %v73_v32  ;;  %v81_v36 = vadd.f32 %v78_v34, %v74_v33 }
 0x174   :  { %82 = vst [vmem:[#allocation6] sm:$0xff] %v80_v35 }
 0x175   :  { %83 = vst [vmem:[#allocation6 + $0x8] sm:$0xff] %v81_v36 }
 0x176   :  { %94 = dma.vmem_to_hbm [thread:$0]  %s90_s21, 256, %s92_s24, [#allocation5]  }
 0x177   :  { %161 = dma.done.wait [#allocation5], 256  }
 0x178   :  { %162 = vsyncadd [#allocation5], 4294967040 }
 0x179   :  { %99 = vsyncpa [#allocation4], 1 }
 0x17a   :  { %100 = vsyncpa [#allocation5], 1 }

</bundles_post_ra>
